<compile_context>
chip_gen: v6e
topology: v6e:2x2x1
jax: 0.10.0
libtpu: 0.0.40
codegen_flags: <defaults>
</compile_context>

<pallas_src>
import functools

import jax
import jax.numpy as jnp
from jax.experimental import pallas as pl
from jax.experimental.pallas import tpu as pltpu

EPS = 1e-5  # nn.BatchNorm2d default eps


# --------------------------------- helpers ----------------------------------
def _round_up(x, m):
    return (x + m - 1) // m * m


def _pick_tile(total, candidates):
    for c in candidates:
        if total % c == 0:
            return c
    return total


def _pad2d(a, rows, cols):
    r, c = a.shape
    return jnp.pad(a, ((0, rows - r), (0, cols - c)))


def _tpu_vmem_capacity():
    try:
        return int(pltpu.get_tpu_info().vmem_capacity_bytes)
    except Exception:
        return 64 << 20  # conservative fallback (v7x per-TC physical VMEM)


def _choose_tm(m, cap=512):
    """Row-tile size: multiple of 8, <= cap, and (for v7x megacore) >= 2 M tiles."""
    m8 = _round_up(m, 8)
    tm = min(cap, m8)
    if m8 > 8 and _round_up(m8, tm) // tm < 2:
        tm = max(8, _round_up((m8 + 1) // 2, 8))
    return tm


# -------------------- kernel 1: conv-GEMM + BN partial stats ----------------
def _finalize_block(acc, z_ref, sum_ref, ssq_ref):
    """Write bf16 conv output + per-M-tile channel sum / sum-of-squares (from f32 acc)."""
    cp = acc.shape[1]
    z_ref[...] = acc.astype(z_ref.dtype)
    s = jnp.sum(acc, axis=0, keepdims=True)          # (1, Cp)
    ss = jnp.sum(acc * acc, axis=0, keepdims=True)   # (1, Cp)
    sum_ref[0] = jnp.broadcast_to(s, (8, cp))
    ssq_ref[0] = jnp.broadcast_to(ss, (8, cp))


def _conv_gemm_single_k_kernel(p_ref, w_ref, z_ref, sum_ref, ssq_ref):
    # Full-K GEMM in one MXU pass; weights are VMEM-resident (constant block index).
    acc = jnp.dot(p_ref[...], w_ref[...], preferred_element_type=jnp.float32)
    _finalize_block(acc, z_ref, sum_ref, ssq_ref)


def _conv_gemm_tiled_k_kernel(p_ref, w_ref, z_ref, sum_ref, ssq_ref, acc_ref):
    k = pl.program_id(1)

    @pl.when(k == 0)
    def _():
        acc_ref[...] = jnp.zeros_like(acc_ref)

    acc_ref[...] += jnp.dot(p_ref[...], w_ref[...], preferred_element_type=jnp.float32)

    # NOTE: z/sum/ssq blocks keep a constant block index across the K axis, so they stay
    # resident and are written back only after the last K step.  K must remain the
    # innermost ("arbitrary") grid axis for this to hold.
    @pl.when(k == pl.num_programs(1) - 1)
    def _():
        _finalize_block(acc_ref[...], z_ref, sum_ref, ssq_ref)


def conv_gemm(patches, weights, tm):
    """patches: (M_pad, K_pad) bf16; weights: (K_pad, Cp) bf16.
    Returns z (M_pad, Cp) bf16 plus per-M-tile partial sums / sum-of-squares (f32)."""
    m_pad, k_pad = patches.shape
    cp = weights.shape[1]
    nm = m_pad // tm
    vmem_cap = _tpu_vmem_capacity()

    weight_bytes = k_pad * cp * weights.dtype.itemsize
    # Pin the full weight matrix in VMEM (single K step) when it is comfortably small.
    single_k = 2 * weight_bytes <= max(vmem_cap // 8, 4 << 20)

    if single_k:
        tk, nk = k_pad, 1
        grid = (nm,)
        in_specs = [
            pl.BlockSpec((tm, k_pad), lambda i: (i, 0)),
            pl.BlockSpec((k_pad, cp), lambda i: (0, 0)),   # constant index -> fetched once
        ]
        out_specs = (
            pl.BlockSpec((tm, cp), lambda i: (i, 0)),
            pl.BlockSpec((1, 8, cp), lambda i: (i, 0, 0)),
            pl.BlockSpec((1, 8, cp), lambda i: (i, 0, 0)),
        )
        scratch = []
        kern = _conv_gemm_single_k_kernel
        dims = ("parallel",)
    else:
        tk = _pick_tile(k_pad, (1024, 512, 256, 128))
        nk = k_pad // tk
        grid = (nm, nk)
        in_specs = [
            pl.BlockSpec((tm, tk), lambda i, k: (i, k)),
            pl.BlockSpec((tk, cp), lambda i, k: (k, 0)),
        ]
        out_specs = (
            pl.BlockSpec((tm, cp), lambda i, k: (i, 0)),
            pl.BlockSpec((1, 8, cp), lambda i, k: (i, 0, 0)),
            pl.BlockSpec((1, 8, cp), lambda i, k: (i, 0, 0)),
        )
        scratch = [pltpu.VMEM((tm, cp), jnp.float32)]
        kern = _conv_gemm_tiled_k_kernel
        dims = ("parallel", "arbitrary")

    # VMEM working-set estimate (double-buffered inputs/outputs) -> scoped limit,
    # clamped below the physical per-core capacity.
    est = (2 * tm * tk * 2          # patch tile (bf16, double-buffered)
           + 2 * tk * cp * 2        # weight block
           + 2 * tm * cp * 2        # z output block (bf16)
           + 4 * 8 * cp * 4)        # stats blocks
    if not single_k:
        est += tm * cp * 4          # f32 scratch accumulator
    vmem_limit = int(min(max(2 * est + (4 << 20), 16 << 20), int(vmem_cap * 0.9)))

    flops = 2 * m_pad * k_pad * cp
    w_reads = 1 if single_k else nm
    bytes_accessed = (m_pad * k_pad * 2            # patches read
                      + w_reads * k_pad * cp * 2   # weight reads
                      + m_pad * cp * 2             # z write (bf16)
                      + 2 * nm * 8 * cp * 4)       # stats writes

    return pl.pallas_call(
        kern,
        grid=grid,
        in_specs=in_specs,
        out_specs=out_specs,
        out_shape=(
            jax.ShapeDtypeStruct((m_pad, cp), jnp.bfloat16),
            jax.ShapeDtypeStruct((nm, 8, cp), jnp.float32),
            jax.ShapeDtypeStruct((nm, 8, cp), jnp.float32),
        ),
        scratch_shapes=scratch,
        compiler_params=pltpu.CompilerParams(
            dimension_semantics=dims, vmem_limit_bytes=vmem_limit),
        cost_estimate=pl.CostEstimate(flops=int(flops), transcendentals=0,
                                      bytes_accessed=int(bytes_accessed)),
    )(patches, weights)


# ----------------- kernel 2: BN scale/shift (+identity) + ReLU epilogue -----
def _bn_epilogue_kernel(*refs, identity_mode):
    if identity_mode == "none":
        z_ref, sc_ref, sh_ref, o_ref = refs
        extra = 0.0
    elif identity_mode == "raw":
        z_ref, sc_ref, sh_ref, id_ref, o_ref = refs
        extra = id_ref[...].astype(jnp.float32)
    else:  # "bn": fused downsample conv output + its BN
        z_ref, sc_ref, sh_ref, idz_ref, idsc_ref, idsh_ref, o_ref = refs
        extra = idz_ref[...].astype(jnp.float32) * idsc_ref[...] + idsh_ref[...]
    out = z_ref[...].astype(jnp.float32) * sc_ref[...] + sh_ref[...] + extra  # f32 math
    o_ref[...] = jnp.maximum(out, 0.0).astype(o_ref.dtype)


def bn_epilogue(z, scale, shift, tm, identity=None, id_scale=None, id_shift=None,
                out_dtype=jnp.float32):
    m_pad, cp = z.shape
    nm = m_pad // tm
    row_spec = pl.BlockSpec((tm, cp), lambda i: (i, 0))
    vec_spec = pl.BlockSpec((1, cp), lambda i: (0, 0))
    args = [z, scale, shift]
    in_specs = [row_spec, vec_spec, vec_spec]
    if identity is None:
        mode = "none"
    elif id_scale is None:
        mode = "raw"
        args += [identity]
        in_specs += [row_spec]
    else:
        mode = "bn"
        args += [identity, id_scale, id_shift]
        in_specs += [row_spec, vec_spec, vec_spec]
    return pl.pallas_call(
        functools.partial(_bn_epilogue_kernel, identity_mode=mode),
        grid=(nm,),
        in_specs=in_specs,
        out_specs=row_spec,
        out_shape=jax.ShapeDtypeStruct((m_pad, cp), out_dtype),
        compiler_params=pltpu.CompilerParams(dimension_semantics=("parallel",)),
    )(*args)


# ---------------------------- glue (plain JAX) -------------------------------
def _bn_scale_shift(part_sum, part_ssq, gamma, beta, m_real, cp):
    """Tiny cross-tile reduction of BN partial stats -> per-channel scale/shift.
    NOTE: E[x^2]-E[x]^2 variance in f32; fine at current tolerances."""
    c = gamma.shape[0]
    g = jnp.pad(gamma.astype(jnp.float32), (0, cp - c))
    b = jnp.pad(beta.astype(jnp.float32), (0, cp - c))
    col_sum = jnp.sum(part_sum[:, 0, :], axis=0)
    col_ssq = jnp.sum(part_ssq[:, 0, :], axis=0)
    mean = col_sum / m_real
    var = jnp.maximum(col_ssq / m_real - mean * mean, 0.0)   # biased variance
    scale = g * jax.lax.rsqrt(var + EPS)
    shift = b - mean * scale
    return scale.reshape(1, cp), shift.reshape(1, cp)


def _im2col(x, ksize, stride, pad):
    """x: (N,H,W,C) -> (N*Ho*Wo, ksize*ksize*C); column order (kh, kw, c)."""
    n, h, w, c = x.shape
    xp = jnp.pad(x, ((0, 0), (pad, pad), (pad, pad), (0, 0)))
    ho = (h + 2 * pad - ksize) // stride + 1
    wo = (w + 2 * pad - ksize) // stride + 1
    cols = []
    for kh in range(ksize):
        for kw in range(ksize):
            cols.append(xp[:, kh:kh + stride * ho:stride, kw:kw + stride * wo:stride, :])
    patches = jnp.stack(cols, axis=3)  # (N, Ho, Wo, K*K, C)
    return patches.reshape(n * ho * wo, ksize * ksize * c), ho, wo


def init_params(key, in_planes, planes, stride):
    """Deterministic synthetic parameters (shapes mirror ResNetBlock.__init__)."""
    ks = jax.random.split(key, 9)
    params = {
        "w1": 0.1 * jax.random.normal(ks[0], (3, 3, in_planes, planes), jnp.float32),
        "g1": 1.0 + 0.1 * jax.random.normal(ks[1], (planes,), jnp.float32),
        "b1": 0.1 * jax.random.normal(ks[2], (planes,), jnp.float32),
        "w2": 0.1 * jax.random.normal(ks[3], (3, 3, planes, planes), jnp.float32),
        "g2": 1.0 + 0.1 * jax.random.normal(ks[4], (planes,), jnp.float32),
        "b2": 0.1 * jax.random.normal(ks[5], (planes,), jnp.float32),
    }
    if stride != 1 or in_planes != planes:  # downsample branch exists
        params["wd"] = 0.1 * jax.random.normal(ks[6], (1, 1, in_planes, planes), jnp.float32)
        params["gd"] = 1.0 + 0.05 * jax.random.normal(ks[7], (planes,), jnp.float32)
        params["bd"] = 0.05 * jax.random.normal(ks[8], (planes,), jnp.float32)
    return params


def resnet_block_forward(x_nchw, params, stride):
    """Forward pass of ResNetBlock; Pallas kernels do the conv GEMMs + BN/ReLU epilogues."""
    n, cin, h, w = x_nchw.shape
    planes = params["w1"].shape[-1]
    x = jnp.transpose(x_nchw, (0, 2, 3, 1))              # NCHW -> NHWC
    x_bf = x.astype(jnp.bfloat16)

    ho = (h + 2 - 3) // stride + 1
    wo = (w + 2 - 3) // stride + 1
    m = n * ho * wo
    cp = _round_up(planes, 128)              # lane-dense output channels
    tm = _choose_tm(m)                       # >=2 M tiles when possible (v7x megacore)
    m_pad = _round_up(m, tm)

    # ---- conv1 (3x3, stride, pad=1, no bias) + bn1 + relu  -> h1 (bf16) ----
    p1, _, _ = _im2col(x_bf, 3, stride, 1)
    k1 = 9 * cin
    k1_pad = _round_up(k1, 128)
    p1p = _pad2d(p1, m_pad, k1_pad)
    w1p = _pad2d(params["w1"].reshape(k1, planes), k1_pad, cp).astype(jnp.bfloat16)
    z1, s1, q1 = conv_gemm(p1p, w1p, tm)
    sc1, sh1 = _bn_scale_shift(s1, q1, params["g1"], params["b1"], m, cp)
    h1 = bn_epilogue(z1, sc1, sh1, tm, out_dtype=jnp.bfloat16)
    h1_nhwc = h1[:m, :planes].reshape(n, ho, wo, planes)

    # ---- identity / downsample (1x1 conv GEMM; its BN is fused into the final epilogue) ----
    if "wd" in params:
        xs = x_bf[:, ::stride, ::stride, :].reshape(m, cin)
        cin_pad = _round_up(cin, 128)
        xsp = _pad2d(xs, m_pad, cin_pad)
        wdp = _pad2d(params["wd"].reshape(cin, planes), cin_pad, cp).astype(jnp.bfloat16)
        zd, sd, qd = conv_gemm(xsp, wdp, tm)
        id_scale, id_shift = _bn_scale_shift(sd, qd, params["gd"], params["bd"], m, cp)
        identity = zd                                              # bf16
    else:
        identity = _pad2d(x_bf.reshape(m, cin), m_pad, cp)         # bf16 raw shortcut
        id_scale = id_shift = None

    # ---- conv2 (3x3, stride=1, pad=1, no bias) + bn2 + identity + relu ----
    p2, _, _ = _im2col(h1_nhwc, 3, 1, 1)
    k2 = 9 * planes
    k2_pad = _round_up(k2, 128)
    p2p = _pad2d(p2, m_pad, k2_pad)
    w2p = _pad2d(params["w2"].reshape(k2, planes), k2_pad, cp).astype(jnp.bfloat16)
    z2, s2, q2 = conv_gemm(p2p, w2p, tm)
    sc2, sh2 = _bn_scale_shift(s2, q2, params["g2"], params["b2"], m, cp)
    out = bn_epilogue(z2, sc2, sh2, tm, identity=identity,
                      id_scale=id_scale, id_shift=id_shift, out_dtype=jnp.float32)

    out = out[:m, :planes].reshape(n, ho, wo, planes)
    return jnp.transpose(out, (0, 3, 1, 2))  # back to NCHW


# ---------------------------- pure-JAX reference ----------------------------
def _bn_ref(y, g, b):
    mean = jnp.mean(y, axis=(0, 1, 2), keepdims=True)
    var = jnp.mean((y - mean) ** 2, axis=(0, 1, 2), keepdims=True)
    return (y - mean) * jax.lax.rsqrt(var + EPS) * g + b


def resnet_block_ref(x_nchw, params, stride):
    x = jnp.transpose(x_nchw, (0, 2, 3, 1)).astype(jnp.float32)
    dn = ("NHWC", "HWIO", "NHWC")
    hp = jax.lax.Precision.HIGHEST
    y = jax.lax.conv_general_dilated(x, params["w1"], (stride, stride), ((1, 1), (1, 1)),
                                     dimension_numbers=dn, precision=hp)
    y = jnp.maximum(_bn_ref(y, params["g1"], params["b1"]), 0.0)
    y = jax.lax.conv_general_dilated(y, params["w2"], (1, 1), ((1, 1), (1, 1)),
                                     dimension_numbers=dn, precision=hp)
    y = _bn_ref(y, params["g2"], params["b2"])
    if "wd" in params:
        ident = jax.lax.conv_general_dilated(x, params["wd"], (stride, stride), ((0, 0), (0, 0)),
                                             dimension_numbers=dn, precision=hp)
        ident = _bn_ref(ident, params["gd"], params["bd"])
    else:
        ident = x
    out = jnp.maximum(y + ident, 0.0)
    return jnp.transpose(out, (0, 3, 1, 2))


# ----------------------------------- main ------------------------------------
if __name__ == "__main__":
    key = jax.random.PRNGKey(0)
    kx, kp1, kp2 = jax.random.split(key, 3)

    # PyTorch-style NCHW input
    x = jax.random.normal(kx, (2, 4, 16, 16), jnp.float32)

    fwd = jax.jit(resnet_block_forward, static_argnums=2)

    # Case 1: stride=2, in_planes(4) != planes(8) -> downsample branch active
    params = init_params(kp1, in_planes=4, planes=8, stride=2)
    out = jax.block_until_ready(fwd(x, params, 2))
    ref = resnet_block_ref(x, params, 2)
    assert out.shape == (2, 8, 8, 8), out.shape
    # bf16 MXU inputs / bf16 intermediates -> looser tolerance than full-f32 reference
    assert jnp.allclose(out, ref, atol=5e-2, rtol=5e-2), float(jnp.max(jnp.abs(out - ref)))

    # Case 2: stride=1, in_planes == planes -> plain identity shortcut
    params2 = init_params(kp2, in_planes=4, planes=4, stride=1)
    out2 = jax.block_until_ready(fwd(x, params2, 1))
    ref2 = resnet_block_ref(x, params2, 1)
    assert out2.shape == (2, 4, 16, 16), out2.shape
    assert jnp.allclose(out2, ref2, atol=5e-2, rtol=5e-2), float(jnp.max(jnp.abs(out2 - ref2)))

    print("KERNEL_OK")
</pallas_src>

<mosaic_0001>
module attributes {stable_mosaic.version = 11 : i64} {
  func.func @_conv_gemm_single_k_kernel(%arg0: i32, %arg1: memref<64x128xbf16, #tpu.memory_space<vmem>>, %arg2: memref<128x128xbf16, #tpu.memory_space<vmem>>, %arg3: memref<64x128xbf16, #tpu.memory_space<vmem>>, %arg4: memref<1x8x128xf32, #tpu.memory_space<vmem>>, %arg5: memref<1x8x128xf32, #tpu.memory_space<vmem>>) attributes {dimension_semantics = [#tpu.dimension_semantics<parallel>], iteration_bounds = array<i64: 2>, scalar_prefetch = 0 : i64, scratch_operands = 0 : i64, tpu.core_type = #tpu.core_type<tc>, window_params = [{transform_indices = @transform_0, window_bounds = array<i64: 64, 128>}, {pipeline_mode = #tpu.pipeline_mode<synchronous>, transform_indices = @transform_1, window_bounds = array<i64: 128, 128>}, {transform_indices = @transform_2, window_bounds = array<i64: 64, 128>}, {transform_indices = @transform_3, window_bounds = array<i64: 1, 8, 128>}, {transform_indices = @transform_4, window_bounds = array<i64: 1, 8, 128>}]} {
    %c0 = arith.constant 0 : index
    %c0_0 = arith.constant 0 : index
    %0 = vector.load %arg1[%c0, %c0_0] : memref<64x128xbf16, #tpu.memory_space<vmem>>, vector<64x128xbf16>
    %c0_1 = arith.constant 0 : index
    %c0_2 = arith.constant 0 : index
    %1 = vector.load %arg2[%c0_1, %c0_2] : memref<128x128xbf16, #tpu.memory_space<vmem>>, vector<128x128xbf16>
    %cst = arith.constant dense<0.000000e+00> : vector<64x128xf32>
    %2 = tpu.matmul %0, %1, %cst {dimension_numbers = #tpu.dot_dimension_numbers<[1], [0], [0], [1], [0, 0, 1, 1], [], []>} : vector<64x128xbf16>, vector<128x128xbf16>, vector<64x128xf32> -> vector<64x128xf32>
    %3 = arith.truncf %2 : vector<64x128xf32> to vector<64x128xbf16>
    %c0_3 = arith.constant 0 : index
    %c0_4 = arith.constant 0 : index
    %4 = vector.load %arg3[%c0_3, %c0_4] : memref<64x128xbf16, #tpu.memory_space<vmem>>, vector<64x128xbf16>
    tpu.vector_store %arg3[%c0_3, %c0_4], %3 {strides = array<i32>} : memref<64x128xbf16, #tpu.memory_space<vmem>>, vector<64x128xbf16>,
    %cst_5 = arith.constant dense<0.000000e+00> : vector<128xf32>
    %5 = vector.multi_reduction <add>, %2, %cst_5 [0] : vector<64x128xf32> to vector<128xf32>
    %6 = vector.shape_cast %5 : vector<128xf32> to vector<1x128xf32>
    %7 = arith.mulf %2, %2 : vector<64x128xf32>
    %cst_6 = arith.constant dense<0.000000e+00> : vector<128xf32>
    %8 = vector.multi_reduction <add>, %7, %cst_6 [0] : vector<64x128xf32> to vector<128xf32>
    %9 = vector.shape_cast %8 : vector<128xf32> to vector<1x128xf32>
    %10 = vector.shape_cast %6 : vector<1x128xf32> to vector<1x128xf32>
    %11 = vector.broadcast %10 : vector<1x128xf32> to vector<8x128xf32>
    %c0_7 = arith.constant 0 : index
    %c0_8 = arith.constant 0 : index
    %c0_9 = arith.constant 0 : index
    %12 = vector.load %arg4[%c0_7, %c0_8, %c0_9] : memref<1x8x128xf32, #tpu.memory_space<vmem>>, vector<1x8x128xf32>
    %13 = vector.shape_cast %12 : vector<1x8x128xf32> to vector<8x128xf32>
    %14 = vector.shape_cast %11 : vector<8x128xf32> to vector<1x8x128xf32>
    tpu.vector_store %arg4[%c0_7, %c0_8, %c0_9], %14 {strides = array<i32>} : memref<1x8x128xf32, #tpu.memory_space<vmem>>, vector<1x8x128xf32>,
    %15 = vector.shape_cast %9 : vector<1x128xf32> to vector<1x128xf32>
    %16 = vector.broadcast %15 : vector<1x128xf32> to vector<8x128xf32>
    %c0_10 = arith.constant 0 : index
    %c0_11 = arith.constant 0 : index
    %c0_12 = arith.constant 0 : index
    %17 = vector.load %arg5[%c0_10, %c0_11, %c0_12] : memref<1x8x128xf32, #tpu.memory_space<vmem>>, vector<1x8x128xf32>
    %18 = vector.shape_cast %17 : vector<1x8x128xf32> to vector<8x128xf32>
    %19 = vector.shape_cast %16 : vector<8x128xf32> to vector<1x8x128xf32>
    tpu.vector_store %arg5[%c0_10, %c0_11, %c0_12], %19 {strides = array<i32>} : memref<1x8x128xf32, #tpu.memory_space<vmem>>, vector<1x8x128xf32>,
    return
  }
  func.func @transform_0(%arg0: i32) -> (i32, i32) {
    %c0_i32 = arith.constant 0 : i32
    %c0_i32_0 = arith.constant 0 : i32
    return %arg0, %c0_i32 : i32, i32
  }
  func.func @transform_1(%arg0: i32) -> (i32, i32) {
    %c0_i32 = arith.constant 0 : i32
    %c0_i32_0 = arith.constant 0 : i32
    %c0_i32_1 = arith.constant 0 : i32
    return %c0_i32, %c0_i32_0 : i32, i32
  }
  func.func @transform_2(%arg0: i32) -> (i32, i32) {
    %c0_i32 = arith.constant 0 : i32
    %c0_i32_0 = arith.constant 0 : i32
    return %arg0, %c0_i32 : i32, i32
  }
  func.func @transform_3(%arg0: i32) -> (i32, i32, i32) {
    %c0_i32 = arith.constant 0 : i32
    %c0_i32_0 = arith.constant 0 : i32
    %c0_i32_1 = arith.constant 0 : i32
    return %arg0, %c0_i32, %c0_i32_0 : i32, i32, i32
  }
  func.func @transform_4(%arg0: i32) -> (i32, i32, i32) {
    %c0_i32 = arith.constant 0 : i32
    %c0_i32_0 = arith.constant 0 : i32
    %c0_i32_1 = arith.constant 0 : i32
    return %arg0, %c0_i32, %c0_i32_0 : i32, i32, i32
  }
}

module attributes {stable_mosaic.version = 11 : i64} {
  func.func @_bn_epilogue_kernel(%arg0: i32, %arg1: memref<64x128xbf16, #tpu.memory_space<vmem>>, %arg2: memref<1x128xf32, #tpu.memory_space<vmem>>, %arg3: memref<1x128xf32, #tpu.memory_space<vmem>>, %arg4: memref<64x128xbf16, #tpu.memory_space<vmem>>) attributes {dimension_semantics = [#tpu.dimension_semantics<parallel>], iteration_bounds = array<i64: 2>, scalar_prefetch = 0 : i64, scratch_operands = 0 : i64, tpu.core_type = #tpu.core_type<tc>, window_params = [{transform_indices = @transform_0, window_bounds = array<i64: 64, 128>}, {pipeline_mode = #tpu.pipeline_mode<synchronous>, transform_indices = @transform_1, window_bounds = array<i64: 1, 128>}, {pipeline_mode = #tpu.pipeline_mode<synchronous>, transform_indices = @transform_2, window_bounds = array<i64: 1, 128>}, {transform_indices = @transform_3, window_bounds = array<i64: 64, 128>}]} {
    %c0 = arith.constant 0 : index
    %c0_0 = arith.constant 0 : index
    %0 = vector.load %arg1[%c0, %c0_0] : memref<64x128xbf16, #tpu.memory_space<vmem>>, vector<64x128xbf16>
    %1 = arith.extf %0 : vector<64x128xbf16> to vector<64x128xf32>
    %c0_1 = arith.constant 0 : index
    %c0_2 = arith.constant 0 : index
    %2 = vector.load %arg2[%c0_1, %c0_2] : memref<1x128xf32, #tpu.memory_space<vmem>>, vector<1x128xf32>
    %3 = vector.broadcast %2 : vector<1x128xf32> to vector<64x128xf32>
    %4 = arith.mulf %1, %3 : vector<64x128xf32>
    %c0_3 = arith.constant 0 : index
    %c0_4 = arith.constant 0 : index
    %5 = vector.load %arg3[%c0_3, %c0_4] : memref<1x128xf32, #tpu.memory_space<vmem>>, vector<1x128xf32>
    %6 = vector.broadcast %5 : vector<1x128xf32> to vector<64x128xf32>
    %7 = arith.addf %4, %6 : vector<64x128xf32>
    %cst = arith.constant 0.000000e+00 : f32
    %8 = vector.broadcast %cst : f32 to vector<64x128xf32>
    %9 = arith.addf %7, %8 : vector<64x128xf32>
    %cst_5 = arith.constant 0.000000e+00 : f32
    %10 = vector.broadcast %cst_5 : f32 to vector<64x128xf32>
    %11 = arith.maximumf %9, %10 : vector<64x128xf32>
    %12 = arith.truncf %11 : vector<64x128xf32> to vector<64x128xbf16>
    %c0_6 = arith.constant 0 : index
    %c0_7 = arith.constant 0 : index
    %13 = vector.load %arg4[%c0_6, %c0_7] : memref<64x128xbf16, #tpu.memory_space<vmem>>, vector<64x128xbf16>
    tpu.vector_store %arg4[%c0_6, %c0_7], %12 {strides = array<i32>} : memref<64x128xbf16, #tpu.memory_space<vmem>>, vector<64x128xbf16>,
    return
  }
  func.func @transform_0(%arg0: i32) -> (i32, i32) {
    %c0_i32 = arith.constant 0 : i32
    %c0_i32_0 = arith.constant 0 : i32
    return %arg0, %c0_i32 : i32, i32
  }
  func.func @transform_1(%arg0: i32) -> (i32, i32) {
    %c0_i32 = arith.constant 0 : i32
    %c0_i32_0 = arith.constant 0 : i32
    %c0_i32_1 = arith.constant 0 : i32
    return %c0_i32, %c0_i32_0 : i32, i32
  }
  func.func @transform_2(%arg0: i32) -> (i32, i32) {
    %c0_i32 = arith.constant 0 : i32
    %c0_i32_0 = arith.constant 0 : i32
    %c0_i32_1 = arith.constant 0 : i32
    return %c0_i32, %c0_i32_0 : i32, i32
  }
  func.func @transform_3(%arg0: i32) -> (i32, i32) {
    %c0_i32 = arith.constant 0 : i32
    %c0_i32_0 = arith.constant 0 : i32
    return %arg0, %c0_i32 : i32, i32
  }
}

module attributes {stable_mosaic.version = 11 : i64} {
  func.func @_bn_epilogue_kernel(%arg0: i32, %arg1: memref<64x128xbf16, #tpu.memory_space<vmem>>, %arg2: memref<1x128xf32, #tpu.memory_space<vmem>>, %arg3: memref<1x128xf32, #tpu.memory_space<vmem>>, %arg4: memref<64x128xbf16, #tpu.memory_space<vmem>>, %arg5: memref<1x128xf32, #tpu.memory_space<vmem>>, %arg6: memref<1x128xf32, #tpu.memory_space<vmem>>, %arg7: memref<64x128xf32, #tpu.memory_space<vmem>>) attributes {dimension_semantics = [#tpu.dimension_semantics<parallel>], iteration_bounds = array<i64: 2>, scalar_prefetch = 0 : i64, scratch_operands = 0 : i64, tpu.core_type = #tpu.core_type<tc>, window_params = [{transform_indices = @transform_0, window_bounds = array<i64: 64, 128>}, {pipeline_mode = #tpu.pipeline_mode<synchronous>, transform_indices = @transform_1, window_bounds = array<i64: 1, 128>}, {pipeline_mode = #tpu.pipeline_mode<synchronous>, transform_indices = @transform_2, window_bounds = array<i64: 1, 128>}, {transform_indices = @transform_3, window_bounds = array<i64: 64, 128>}, {pipeline_mode = #tpu.pipeline_mode<synchronous>, transform_indices = @transform_4, window_bounds = array<i64: 1, 128>}, {pipeline_mode = #tpu.pipeline_mode<synchronous>, transform_indices = @transform_5, window_bounds = array<i64: 1, 128>}, {transform_indices = @transform_6, window_bounds = array<i64: 64, 128>}]} {
    %c0 = arith.constant 0 : index
    %c0_0 = arith.constant 0 : index
    %0 = vector.load %arg4[%c0, %c0_0] : memref<64x128xbf16, #tpu.memory_space<vmem>>, vector<64x128xbf16>
    %1 = arith.extf %0 : vector<64x128xbf16> to vector<64x128xf32>
    %c0_1 = arith.constant 0 : index
    %c0_2 = arith.constant 0 : index
    %2 = vector.load %arg5[%c0_1, %c0_2] : memref<1x128xf32, #tpu.memory_space<vmem>>, vector<1x128xf32>
    %3 = vector.broadcast %2 : vector<1x128xf32> to vector<64x128xf32>
    %4 = arith.mulf %1, %3 : vector<64x128xf32>
    %c0_3 = arith.constant 0 : index
    %c0_4 = arith.constant 0 : index
    %5 = vector.load %arg6[%c0_3, %c0_4] : memref<1x128xf32, #tpu.memory_space<vmem>>, vector<1x128xf32>
    %6 = vector.broadcast %5 : vector<1x128xf32> to vector<64x128xf32>
    %7 = arith.addf %4, %6 : vector<64x128xf32>
    %c0_5 = arith.constant 0 : index
    %c0_6 = arith.constant 0 : index
    %8 = vector.load %arg1[%c0_5, %c0_6] : memref<64x128xbf16, #tpu.memory_space<vmem>>, vector<64x128xbf16>
    %9 = arith.extf %8 : vector<64x128xbf16> to vector<64x128xf32>
    %c0_7 = arith.constant 0 : index
    %c0_8 = arith.constant 0 : index
    %10 = vector.load %arg2[%c0_7, %c0_8] : memref<1x128xf32, #tpu.memory_space<vmem>>, vector<1x128xf32>
    %11 = vector.broadcast %10 : vector<1x128xf32> to vector<64x128xf32>
    %12 = arith.mulf %9, %11 : vector<64x128xf32>
    %c0_9 = arith.constant 0 : index
    %c0_10 = arith.constant 0 : index
    %13 = vector.load %arg3[%c0_9, %c0_10] : memref<1x128xf32, #tpu.memory_space<vmem>>, vector<1x128xf32>
    %14 = vector.broadcast %13 : vector<1x128xf32> to vector<64x128xf32>
    %15 = arith.addf %12, %14 : vector<64x128xf32>
    %16 = arith.addf %15, %7 : vector<64x128xf32>
    %cst = arith.constant 0.000000e+00 : f32
    %17 = vector.broadcast %cst : f32 to vector<64x128xf32>
    %18 = arith.maximumf %16, %17 : vector<64x128xf32>
    %c0_11 = arith.constant 0 : index
    %c0_12 = arith.constant 0 : index
    %19 = vector.load %arg7[%c0_11, %c0_12] : memref<64x128xf32, #tpu.memory_space<vmem>>, vector<64x128xf32>
    tpu.vector_store %arg7[%c0_11, %c0_12], %18 {strides = array<i32>} : memref<64x128xf32, #tpu.memory_space<vmem>>, vector<64x128xf32>,
    return
  }
  func.func @transform_0(%arg0: i32) -> (i32, i32) {
    %c0_i32 = arith.constant 0 : i32
    %c0_i32_0 = arith.constant 0 : i32
    return %arg0, %c0_i32 : i32, i32
  }
  func.func @transform_1(%arg0: i32) -> (i32, i32) {
    %c0_i32 = arith.constant 0 : i32
    %c0_i32_0 = arith.constant 0 : i32
    %c0_i32_1 = arith.constant 0 : i32
    return %c0_i32, %c0_i32_0 : i32, i32
  }
  func.func @transform_2(%arg0: i32) -> (i32, i32) {
    %c0_i32 = arith.constant 0 : i32
    %c0_i32_0 = arith.constant 0 : i32
    %c0_i32_1 = arith.constant 0 : i32
    return %c0_i32, %c0_i32_0 : i32, i32
  }
  func.func @transform_3(%arg0: i32) -> (i32, i32) {
    %c0_i32 = arith.constant 0 : i32
    %c0_i32_0 = arith.constant 0 : i32
    return %arg0, %c0_i32 : i32, i32
  }
  func.func @transform_4(%arg0: i32) -> (i32, i32) {
    %c0_i32 = arith.constant 0 : i32
    %c0_i32_0 = arith.constant 0 : i32
    %c0_i32_1 = arith.constant 0 : i32
    return %c0_i32, %c0_i32_0 : i32, i32
  }
  func.func @transform_5(%arg0: i32) -> (i32, i32) {
    %c0_i32 = arith.constant 0 : i32
    %c0_i32_0 = arith.constant 0 : i32
    %c0_i32_1 = arith.constant 0 : i32
    return %c0_i32, %c0_i32_0 : i32, i32
  }
  func.func @transform_6(%arg0: i32) -> (i32, i32) {
    %c0_i32 = arith.constant 0 : i32
    %c0_i32_0 = arith.constant 0 : i32
    return %arg0, %c0_i32 : i32, i32
  }
}

</mosaic_0001>

<bundles_post_ra>
// kernel: resnet_block_forward.5
= control target key start
LH: loop header
LB: loop body
LE: loop exit
PB: predicated region body
PF: predicated region fallthrough
CT: control target
= control target key end

     0   :  { %s747_s15 = smov 0   ;;  %s812_s0 = inlined_call_operand.vmem [shape: bf16[128,128], index: 0, kind: input, shape index: {}]   ;;  %s813_s1 = inlined_call_operand.vmem [shape: bf16[128,128], index: 1, kind: input, shape index: {}]   ;;  %s814_s2 = inlined_call_operand.vmem [shape: bf16[128,128], index: 2, kind: output, shape index: {0}]   ;;  %s815_s3 = inlined_call_operand.vmem [shape: f32[2,8,128], index: 3, kind: output, shape index: {1}]   ;;  %s816_s4 = inlined_call_operand.vmem [shape: f32[2,8,128], index: 4, kind: output, shape index: {2}]  }
   0x1 LB: > { %s753_s16 = sadd.s32 4294967295, %s720_s15   ;;  %p582_p0 = scmp.ge.s32.totalorder %s720_s15, 1  ;;  %s720_s15 = sphi %s747_s15, %s15_s15  }
   0x2   : > { %p168_p1 = scmp.lt.s32.totalorder %s720_s15, 3 }
   0x4   : > { %p169_p2 = pnand %p582_p0, %p168_p1 }
   0x5   : > { %s583_s19 = sshll.u32 (!%p169_p2), %s753_s16, 3  ;;  %p214_p4 = scmp.lt.s32.totalorder (!%p169_p2), %s753_s16, 1 }
   0x6   : > { %172 = sbr.rel (%p169_p2) target bundleno = 272 (0x110), region = 28  ;;  %p203_p3 = scmp.lt.s32.totalorder (!%p169_p2), %s583_s19, 15 }
   0xb   : > { %v702_v0 = vld [vmem:[%s813_s1 + $0x38] sm:$0xff]   ;;  %v703_v1 = vld [vmem:[%s813_s1 + $0x30] sm:$0xff]   ;;  %s818_s19 = smov (!%p203_p3, %s583_s19), 15  ;;  %v704_v2 = vld [vmem:[%s813_s1 + $0x28] sm:$0xff]   ;;  %s820_s16 = smov (!%p214_p4, %s753_s16), 1 }
   0xc   : > { %654 = vmatprep.subr.bf16.mxu0 %v702_v0  ;;  %678 = vmatprep.subr.bf16.mxu1 %v702_v0  ;;  %s584_s24 = sshll.u32 %s818_s19, 2  ;;  %v705_v3 = vld [vmem:[%s813_s1 + $0x20] sm:$0xff]   ;;  %v706_v6 = vld [vmem:[%s813_s1 + $0x18] sm:$0xff]   ;;  %v707_v7 = vld [vmem:[%s813_s1 + $0x10] sm:$0xff]   ;;  %s587_s17 = sshll.u32 %s820_s16, 3 }
   0xd   : > { %655 = vmatpush3.bf16.msra.mxu0 %v702_v0  ;;  %686 = vmatpush3.bf16.msra.mxu1 %v702_v0  ;;  %s775_s27 = scalar_lea.vmem %s812_s0, %s584_s24  ;;  %v708_v8 = vld [vmem:[%s813_s1 + $0x8] sm:$0xff]   ;;  %v709_v9 = vld [vmem:[%s813_s1] sm:$0xff]   ;;  %s212_s14 = scalar_lea.vmem %s814_s2, %s584_s24 }
   0xe   : > { %656 = vmatprep.subr.bf16.mxu0 %v703_v1  ;;  %679 = vmatprep.subr.bf16.mxu1 %v703_v1  ;;  %v710_v4 = vld [vmem:[%s775_s27] sm:$0xff]   ;;  %v712_v5 = vld [vmem:[%s775_s27 + $0x10] sm:$0xff]   ;;  %v711_v10 = vld [vmem:[%s775_s27 + $0x8] sm:$0xff]   ;;  %s217_s20 = scalar_lea.vmem %s815_s3, %s587_s17  ;;  %s221_s23 = scalar_lea.vmem %s816_s4, %s587_s17 }
   0xf   : > { %670 = vmatprep.mubr.bf16.mxu0 %v710_v4  ;;  %674 = vmatprep.mubr.bf16.mxu1 %v712_v5  ;;  %v713_v11 = vld [vmem:[%s775_s27 + $0x18] sm:$0xff]  }
  0x11   : > { %657 = vmatpush3.bf16.msra.mxu0 %v703_v1  ;;  %687 = vmatpush3.bf16.msra.mxu1 %v703_v1 }
  0x12   : > { %658 = vmatprep.subr.bf16.mxu0 %v704_v2  ;;  %680 = vmatprep.subr.bf16.mxu1 %v704_v2 }
  0x15   : > { %659 = vmatpush3.bf16.msra.mxu0 %v704_v2  ;;  %688 = vmatpush3.bf16.msra.mxu1 %v704_v2 }
  0x16   : > { %660 = vmatprep.subr.bf16.mxu0 %v705_v3  ;;  %681 = vmatprep.subr.bf16.mxu1 %v705_v3 }
  0x19   : > { %661 = vmatpush3.bf16.msra.mxu0 %v705_v3  ;;  %689 = vmatpush3.bf16.msra.mxu1 %v705_v3 }
  0x1a   : > { %662 = vmatprep.subr.bf16.mxu0 %v706_v6  ;;  %682 = vmatprep.subr.bf16.mxu1 %v706_v6 }
  0x1d   : > { %663 = vmatpush3.bf16.msra.mxu0 %v706_v6  ;;  %690 = vmatpush3.bf16.msra.mxu1 %v706_v6 }
  0x1e   : > { %664 = vmatprep.subr.bf16.mxu0 %v707_v7  ;;  %683 = vmatprep.subr.bf16.mxu1 %v707_v7 }
  0x21   : > { %665 = vmatpush3.bf16.msra.mxu0 %v707_v7  ;;  %691 = vmatpush3.bf16.msra.mxu1 %v707_v7 }
  0x22   : > { %666 = vmatprep.subr.bf16.mxu0 %v708_v8  ;;  %684 = vmatprep.subr.bf16.mxu1 %v708_v8 }
  0x25   : > { %667 = vmatpush3.bf16.msra.mxu0 %v708_v8  ;;  %692 = vmatpush3.bf16.msra.mxu1 %v708_v8 }
  0x26   : > { %668 = vmatprep.subr.bf16.mxu0 %v709_v9  ;;  %685 = vmatprep.subr.bf16.mxu1 %v709_v9 }
  0x29   : > { %669 = vmatpush3.bf16.msra.mxu0 %v709_v9  ;;  %693 = vmatpush3.bf16.msra.mxu1 %v709_v9 }
  0x2c   : > { %671 = vmatmul.mubr.bf16.vlgmr.msra.gmra.mxu0 %v711_v10  ;;  %675 = vmatmul.mubr.bf16.vlgmr.msra.gmra.mxu1 %v713_v11 }
  0xec   : > { %v672_v12 = vpop.f32.mrf.mxu0  ;;  %v676_v13 = vpop.f32.mrf.mxu1 }
  0xed   : > { %v439_v27 = vmul.f32 %v672_v12, %v672_v12  ;;  %v443_v39 = vmul.f32 %v676_v13, %v676_v13 }
  0xee   : > { %v353_v14 = vpop.f32.mrf.mxu0  ;;  %v369_v15 = vpop.f32.mrf.mxu1 }
  0xef   : > { %v437_v20 = vmul.f32 %v353_v14, %v353_v14  ;;  %v441_v33 = vmul.f32 %v369_v15, %v369_v15 }
  0xf0   : > { %v673_v16 = vpop.f32.mrf.mxu0  ;;  %v677_v17 = vpop.f32.mrf.mxu1 }
  0xf1   : > { %v627_v18 = vpack.c.bf16 %v673_v16, %v672_v12  ;;  %v637_v19 = vpack.c.bf16 %v677_v17, %v676_v13  ;;  %v440_v30 = vmul.f32 %v673_v16, %v673_v16  ;;  %v444_v42 = vmul.f32 %v677_v17, %v677_v17 }
  0xf2   : > { %v356_v21 = vpop.f32.mrf.mxu0  ;;  %v372_v22 = vpop.f32.mrf.mxu1 }
  0xf3   : > { %639 = vst [vmem:[%s212_s14 + $0x8] sm:$0xff] %v627_v18   ;;  %v622_v23 = vpack.c.bf16 %v356_v21, %v353_v14  ;;  %v424_v24 = vadd.f32 %v356_v21, %v353_v14  ;;  %v438_v25 = vmul.f32 %v356_v21, %v356_v21  ;;  %641 = vst [vmem:[%s212_s14 + $0x18] sm:$0xff] %v637_v19  }
  0xf4   : > { %v632_v26 = vpack.c.bf16 %v372_v22, %v369_v15  ;;  %v442_v37 = vmul.f32 %v372_v22, %v372_v22 }
  0xf5   : > { %623 = vst [vmem:[%s212_s14] sm:$0xff] %v622_v23   ;;  %v425_v28 = vadd.f32 %v672_v12, %v424_v24  ;;  %v445_v29 = vadd.f32 %v438_v25, %v437_v20 }
  0xf6   : > { %640 = vst [vmem:[%s212_s14 + $0x10] sm:$0xff] %v632_v26  }
  0xf7   : > { %v446_v31 = vadd.f32 %v445_v29, %v439_v27  ;;  %v426_v32 = vadd.f32 %v673_v16, %v425_v28 }
  0xf9   : > { %v427_v34 = vadd.f32 %v426_v32, %v369_v15  ;;  %v447_v35 = vadd.f32 %v446_v31, %v440_v30 }
  0xfb   : > { %v428_v36 = vadd.f32 %v427_v34, %v372_v22  ;;  %v448_v38 = vadd.f32 %v447_v35, %v441_v33 }
  0xfd   : > { %v429_v40 = vadd.f32 %v676_v13, %v428_v36  ;;  %v449_v41 = vadd.f32 %v448_v38, %v442_v37 }
  0xff   : > { %v430_v43 = vadd.f32 %v677_v17, %v429_v40  ;;  %v450_v44 = vadd.f32 %v449_v41, %v443_v39 }
 0x101   : > { %v431_v45 = vrot.slane %v430_v43, 4  ;;  %v451_v46 = vadd.f32 %v450_v44, %v444_v42 }
 0x103   : > { %v432_v47 = vadd.f32 %v431_v45, %v430_v43  ;;  %v452_v48 = vrot.slane %v451_v46, 4 }
 0x105   : > { %v433_v49 = vrot.slane %v432_v47, 2  ;;  %v453_v50 = vadd.f32 %v452_v48, %v451_v46 }
 0x107   : > { %v434_v51 = vadd.f32 %v433_v49, %v432_v47  ;;  %v454_v52 = vrot.slane %v453_v50, 2 }
 0x109   : > { %v435_v53 = vrot.slane %v434_v51, 1  ;;  %v455_v54 = vadd.f32 %v454_v52, %v453_v50 }
 0x10b   : > { %v436_v55 = vadd.f32 %v435_v53, %v434_v51  ;;  %v456_v56 = vrot.slane %v455_v54, 1 }
 0x10d   : > { %v457_v57 = vadd.f32 %v456_v56, %v455_v54  ;;  %458 = vst [vmem:[%s217_s20] sm:$0xff] %v436_v55 }
 0x10f   : > { %459 = vst [vmem:[%s221_s23] sm:$0xff] %v457_v57 }
 0x110 PF: > { %s15_s15 = sadd.s32 1, %s720_s15  }
 0x111   : > { %p12_p5 = scmp.ge.s32.totalorder %s15_s15, 4  }
 0x113   :  { %14 = sbr.rel (!%p12_p5) target bundleno = 1 (0x1), region = 82 }

// kernel: resnet_block_forward.6
= control target key start
LH: loop header
LB: loop body
LE: loop exit
PB: predicated region body
PF: predicated region fallthrough
CT: control target
= control target key end

     0   :  { %s439_s12 = smov 0   ;;  %s469_s0 = inlined_call_operand.vmem [shape: bf16[128,128], index: 0, kind: input, shape index: {}]   ;;  %s470_s1 = inlined_call_operand.vmem [shape: f32[1,128], index: 1, kind: input, shape index: {}]   ;;  %s471_s2 = inlined_call_operand.vmem [shape: f32[1,128], index: 2, kind: input, shape index: {}]   ;;  %s472_s3 = inlined_call_operand.vmem [shape: bf16[128,128], index: 3, kind: output, shape index: {}]  }
   0x1 LB: > { %s332_s13 = sadd.s32 4294967295, %s417_s12   ;;  %p336_p0 = scmp.ge.s32.totalorder %s417_s12, 1  ;;  %s417_s12 = sphi %s439_s12, %s13_s12  }
   0x2   : > { %p138_p1 = scmp.lt.s32.totalorder %s417_s12, 3 }
   0x4   : > { %p139_p2 = pnand %p336_p0, %p138_p1 }
   0x5   : > { %s337_s14 = sshll.u32 (!%p139_p2), %s332_s13, 3 }
   0x6   : > { %142 = sbr.rel (%p139_p2) target bundleno = 27 (0x1b), region = 32  ;;  %p163_p3 = scmp.lt.s32.totalorder (!%p139_p2), %s337_s14, 15 }
   0xb   : > { %s474_s14 = smov (!%p163_p3, %s337_s14), 15  ;;  %v341_v0 = vld [vmem:[%s470_s1] ss:$0 sm:$0xff] }
   0xc   : > { %s338_s15 = sshll.u32 %s474_s14, 2  ;;  %v342_v9 = vld [vmem:[%s471_s2] ss:$0 sm:$0xff] }
   0xd   : > { %s166_s18 = scalar_lea.vmem %s469_s0, %s338_s15  ;;  %s172_s25 = scalar_lea.vmem %s472_s3, %s338_s15 }
   0xe   : > { %v362_v1 = vld [vmem:[%s166_s18] sm:$0xff]   ;;  %v397_v2 = vld [vmem:[%s166_s18 + $0x8] sm:$0xff]   ;;  %v398_v3 = vld [vmem:[%s166_s18 + $0x10] sm:$0xff]  }
   0xf   : > { %v363_v4 = vunpack.c.l.bf16 %v362_v1  ;;  %v364_v5 = vunpack.c.h.bf16 %v362_v1  ;;  %v367_v6 = vunpack.c.l.bf16 %v397_v2  ;;  %v368_v7 = vunpack.c.h.bf16 %v397_v2  ;;  %v399_v8 = vld [vmem:[%s166_s18 + $0x18] sm:$0xff]  }
  0x10   : > { %v371_v10 = vunpack.c.l.bf16 %v398_v3  ;;  %v372_v11 = vunpack.c.h.bf16 %v398_v3  ;;  %v375_v12 = vunpack.c.l.bf16 %v399_v8  ;;  %v376_v13 = vunpack.c.h.bf16 %v399_v8 }
  0x11   : > { %v197_v14 = vmul.f32 %v363_v4, %v341_v0  ;;  %v198_v15 = vmul.f32 %v364_v5, %v341_v0  ;;  %v199_v16 = vmul.f32 %v367_v6, %v341_v0  ;;  %v200_v17 = vmul.f32 %v368_v7, %v341_v0 }
  0x12   : > { %v201_v18 = vmul.f32 %v371_v10, %v341_v0  ;;  %v202_v19 = vmul.f32 %v372_v11, %v341_v0  ;;  %v203_v20 = vmul.f32 %v375_v12, %v341_v0  ;;  %v204_v21 = vmul.f32 %v376_v13, %v341_v0 }
  0x13   : > { %v212_v22 = vadd.f32 %v342_v9, %v197_v14  ;;  %v213_v23 = vadd.f32 %v342_v9, %v198_v15  ;;  %v214_v24 = vadd.f32 %v342_v9, %v199_v16  ;;  %v215_v25 = vadd.f32 %v342_v9, %v200_v17 }
  0x14   : > { %v216_v26 = vadd.f32 %v342_v9, %v201_v18  ;;  %v217_v27 = vadd.f32 %v342_v9, %v202_v19  ;;  %v218_v28 = vadd.f32 %v342_v9, %v203_v20  ;;  %v219_v29 = vadd.f32 %v342_v9, %v204_v21 }
  0x15   : > { %v228_v30 = vmax.f32 %v212_v22, 0.0  ;;  %v229_v31 = vmax.f32 %v213_v23, 0.0  ;;  %v230_v32 = vmax.f32 %v214_v24, 0.0  ;;  %v231_v33 = vmax.f32 %v215_v25, 0.0 }
  0x16   : > { %v232_v34 = vmax.f32 %v216_v26, 0.0  ;;  %v233_v35 = vmax.f32 %v217_v27, 0.0  ;;  %v234_v36 = vmax.f32 %v218_v28, 0.0  ;;  %v235_v37 = vmax.f32 %v219_v29, 0.0 }
  0x17   : > { %v380_v38 = vpack.c.bf16 %v229_v31, %v228_v30  ;;  %v385_v39 = vpack.c.bf16 %v231_v33, %v230_v32 }
  0x18   : > { %v390_v40 = vpack.c.bf16 %v233_v35, %v232_v34  ;;  %v395_v41 = vpack.c.bf16 %v235_v37, %v234_v36 }
  0x19   : > { %381 = vst [vmem:[%s172_s25] sm:$0xff] %v380_v38   ;;  %400 = vst [vmem:[%s172_s25 + $0x8] sm:$0xff] %v385_v39  }
  0x1a   : > { %401 = vst [vmem:[%s172_s25 + $0x10] sm:$0xff] %v390_v40   ;;  %402 = vst [vmem:[%s172_s25 + $0x18] sm:$0xff] %v395_v41  }
  0x1b PF: > { %s13_s12 = sadd.s32 1, %s417_s12  }
  0x1c   : > { %p10_p4 = scmp.ge.s32.totalorder %s13_s12, 4  }
  0x1e   :  { %12 = sbr.rel (!%p10_p4) target bundleno = 1 (0x1), region = 62 }

// kernel: resnet_block_forward.9
= control target key start
LH: loop header
LB: loop body
LE: loop exit
PB: predicated region body
PF: predicated region fallthrough
CT: control target
= control target key end

     0   :  { %s567_s21 = smov 0   ;;  %s665_s0 = inlined_call_operand.vmem [shape: bf16[128,128], index: 0, kind: input, shape index: {}]   ;;  %s666_s1 = inlined_call_operand.vmem [shape: f32[1,128], index: 1, kind: input, shape index: {}]   ;;  %s667_s2 = inlined_call_operand.vmem [shape: f32[1,128], index: 2, kind: input, shape index: {}]   ;;  %s668_s3 = inlined_call_operand.vmem [shape: bf16[128,128], index: 3, kind: input, shape index: {}]   ;;  %s669_s4 = inlined_call_operand.vmem [shape: f32[1,128], index: 4, kind: input, shape index: {}]   ;;  %s670_s5 = inlined_call_operand.vmem [shape: f32[1,128], index: 5, kind: input, shape index: {}]   ;;  %s671_s6 = inlined_call_operand.vmem [shape: f32[128,128], index: 6, kind: output, shape index: {}]  }
   0x1 LB: > { %s461_s22 = sadd.s32 4294967295, %s530_s21   ;;  %p465_p0 = scmp.ge.s32.totalorder %s530_s21, 1  ;;  %s530_s21 = sphi %s567_s21, %s16_s21  }
   0x2   : > { %p224_p1 = scmp.lt.s32.totalorder %s530_s21, 3 }
   0x4   : > { %p225_p2 = pnand %p465_p0, %p224_p1 }
   0x5   : > { %s466_s23 = sshll.u32 (!%p225_p2), %s461_s22, 3 }
   0x6   : > { %228 = sbr.rel (%p225_p2) target bundleno = 37 (0x25), region = 44  ;;  %p260_p3 = scmp.lt.s32.totalorder (!%p225_p2), %s466_s23, 15 }
   0xb   : > { %s673_s23 = smov (!%p260_p3, %s466_s23), 15  ;;  %v591_v0 = vld [vmem:[%s669_s4] ss:$0 sm:$0xff] }
   0xc   : > { %s467_s24 = sshll.u32 %s673_s23, 2  ;;  %v596_v1 = vld [vmem:[%s666_s1] ss:$0 sm:$0xff]  ;;  %s471_s15 = sshll.u32 %s673_s23, 3 }
   0xd   : > { %s581_s27 = scalar_lea.vmem %s665_s0, %s467_s24  ;;  %s586_s30 = scalar_lea.vmem %s668_s3, %s467_s24  ;;  %v605_v10 = vld [vmem:[%s670_s5] ss:$0 sm:$0xff] }
   0xe   : > { %v479_v2 = vld [vmem:[%s586_s30] sm:$0xff]   ;;  %v510_v4 = vld [vmem:[%s586_s30 + $0x8] sm:$0xff]   ;;  %v511_v24 = vld [vmem:[%s586_s30 + $0x10] sm:$0xff]   ;;  %s634_s18 = scalar_lea.vmem %s671_s6, %s471_s15 }
   0xf   : > { %v495_v3 = vld [vmem:[%s581_s27] sm:$0xff]   ;;  %v480_v5 = vunpack.c.l.bf16 %v479_v2  ;;  %v481_v7 = vunpack.c.h.bf16 %v479_v2  ;;  %v513_v9 = vld [vmem:[%s581_s27 + $0x8] sm:$0xff]   ;;  %v484_v12 = vunpack.c.l.bf16 %v510_v4  ;;  %v485_v14 = vunpack.c.h.bf16 %v510_v4  ;;  %v514_v25 = vld [vmem:[%s581_s27 + $0x10] sm:$0xff]  }
  0x10   : > { %v496_v6 = vunpack.c.l.bf16 %v495_v3  ;;  %v497_v8 = vunpack.c.h.bf16 %v495_v3  ;;  %v610_v11 = vld [vmem:[%s667_s2] ss:$0 sm:$0xff]  ;;  %v500_v13 = vunpack.c.l.bf16 %v513_v9  ;;  %v501_v15 = vunpack.c.h.bf16 %v513_v9  ;;  %v512_v42 = vld [vmem:[%s586_s30 + $0x18] sm:$0xff]  }
  0x11   : > { %v300_v16 = vmul.f32 %v480_v5, %v591_v0  ;;  %v301_v18 = vmul.f32 %v481_v7, %v591_v0  ;;  %v302_v20 = vmul.f32 %v484_v12, %v591_v0  ;;  %v303_v22 = vmul.f32 %v485_v14, %v591_v0  ;;  %v515_v43 = vld [vmem:[%s581_s27 + $0x18] sm:$0xff]  }
  0x12   : > { %v346_v17 = vmul.f32 %v496_v6, %v596_v1  ;;  %v347_v19 = vmul.f32 %v497_v8, %v596_v1  ;;  %v348_v21 = vmul.f32 %v500_v13, %v596_v1  ;;  %v349_v23 = vmul.f32 %v501_v15, %v596_v1 }
  0x13   : > { %v315_v26 = vadd.f32 %v605_v10, %v300_v16  ;;  %v316_v28 = vadd.f32 %v605_v10, %v301_v18  ;;  %v317_v30 = vadd.f32 %v605_v10, %v302_v20  ;;  %v318_v32 = vadd.f32 %v605_v10, %v303_v22 }
  0x14   : > { %v361_v27 = vadd.f32 %v610_v11, %v346_v17  ;;  %v362_v29 = vadd.f32 %v610_v11, %v347_v19  ;;  %v363_v31 = vadd.f32 %v610_v11, %v348_v21  ;;  %v364_v33 = vadd.f32 %v610_v11, %v349_v23 }
  0x15   : > { %v488_v36 = vunpack.c.l.bf16 %v511_v24  ;;  %v504_v37 = vunpack.c.l.bf16 %v514_v25  ;;  %v489_v40 = vunpack.c.h.bf16 %v511_v24  ;;  %v505_v41 = vunpack.c.h.bf16 %v514_v25 }
  0x16   : > { %v369_v34 = vadd.f32 %v361_v27, %v315_v26  ;;  %v370_v35 = vadd.f32 %v362_v29, %v316_v28  ;;  %v371_v38 = vadd.f32 %v363_v31, %v317_v30  ;;  %v372_v39 = vadd.f32 %v364_v33, %v318_v32 }
  0x17   : > { %v304_v46 = vmul.f32 %v488_v36, %v591_v0  ;;  %v350_v47 = vmul.f32 %v504_v37, %v596_v1  ;;  %v305_v50 = vmul.f32 %v489_v40, %v591_v0  ;;  %v351_v51 = vmul.f32 %v505_v41, %v596_v1 }
  0x18   : > { %v377_v44 = vmax.f32 %v369_v34, 0.0  ;;  %v378_v45 = vmax.f32 %v370_v35, 0.0  ;;  %v379_v48 = vmax.f32 %v371_v38, 0.0  ;;  %v380_v49 = vmax.f32 %v372_v39, 0.0 }
  0x19   : > { %v319_v52 = vadd.f32 %v605_v10, %v304_v46  ;;  %v365_v53 = vadd.f32 %v610_v11, %v350_v47  ;;  %v492_v54 = vunpack.c.l.bf16 %v512_v42  ;;  %v508_v55 = vunpack.c.l.bf16 %v515_v43 }
  0x1a   : > { %385 = vst [vmem:[%s634_s18] sm:$0xff] %v377_v44  ;;  %386 = vst [vmem:[%s634_s18 + $0x8] sm:$0xff] %v378_v45  ;;  %v320_v56 = vadd.f32 %v605_v10, %v305_v50  ;;  %v366_v57 = vadd.f32 %v610_v11, %v351_v51  ;;  %v493_v58 = vunpack.c.h.bf16 %v512_v42  ;;  %v509_v59 = vunpack.c.h.bf16 %v515_v43 }
  0x1b   : > { %387 = vst [vmem:[%s634_s18 + $0x10] sm:$0xff] %v379_v48  ;;  %388 = vst [vmem:[%s634_s18 + $0x18] sm:$0xff] %v380_v49  ;;  %v373_v60 = vadd.f32 %v365_v53, %v319_v52  ;;  %v306_v61 = vmul.f32 %v492_v54, %v591_v0  ;;  %v352_v62 = vmul.f32 %v508_v55, %v596_v1 }
  0x1c   : > { %v374_v63 = vadd.f32 %v366_v57, %v320_v56  ;;  %v307_v2 = vmul.f32 %v493_v58, %v591_v0  ;;  %v353_v3 = vmul.f32 %v509_v59, %v596_v1 }
  0x1d   : > { %v381_v4 = vmax.f32 %v373_v60, 0.0  ;;  %v321_v5 = vadd.f32 %v605_v10, %v306_v61  ;;  %v367_v6 = vadd.f32 %v610_v11, %v352_v62 }
  0x1e   : > { %v382_v7 = vmax.f32 %v374_v63, 0.0  ;;  %v322_v8 = vadd.f32 %v605_v10, %v307_v2  ;;  %v368_v9 = vadd.f32 %v610_v11, %v353_v3 }
  0x1f   : > { %389 = vst [vmem:[%s634_s18 + $0x20] sm:$0xff] %v381_v4  ;;  %v375_v12 = vadd.f32 %v367_v6, %v321_v5 }
  0x20   : > { %390 = vst [vmem:[%s634_s18 + $0x28] sm:$0xff] %v382_v7  ;;  %v376_v13 = vadd.f32 %v368_v9, %v322_v8 }
  0x21   : > { %v383_v14 = vmax.f32 %v375_v12, 0.0 }
  0x22   : > { %v384_v15 = vmax.f32 %v376_v13, 0.0 }
  0x23   : > { %391 = vst [vmem:[%s634_s18 + $0x30] sm:$0xff] %v383_v14 }
  0x24   : > { %392 = vst [vmem:[%s634_s18 + $0x38] sm:$0xff] %v384_v15 }
  0x25 PF: > { %s16_s21 = sadd.s32 1, %s530_s21  }
  0x26   : > { %p13_p4 = scmp.ge.s32.totalorder %s16_s21, 4  }
  0x28   :  { %15 = sbr.rel (!%p13_p4) target bundleno = 1 (0x1), region = 77 }

</bundles_post_ra>
